<compile_context>
chip_gen: v7x
topology: tpu7x:2x2x1
jax: 0.10.0
libtpu: 0.0.40
codegen_flags: <defaults>
</compile_context>

<pallas_src>
import functools

import jax
import jax.numpy as jnp
import numpy as np
from jax import lax
from jax.experimental import pallas as pl
from jax.experimental.pallas import tpu as pltpu


# ----------------------------------------------------------------------------
# Fused kernel: ReLU -> (pool via MXU matmul) -> scaled 1x1 conv -> + bias
# (no-preprocess path: just the pool matmul, no ReLU, matching PyTorch)
# ----------------------------------------------------------------------------
def _pooling_block_kernel(*refs, has_pre):
    if has_pre:
        x_ref, w_ref, b_ref, p_ref, o_ref = refs
        z = jnp.maximum(x_ref[...], 0.0)                      # ReLU
        zp = jnp.dot(z, p_ref[...],                           # pool first (C_in rows)
                     preferred_element_type=jnp.float32)
        o_ref[...] = (jnp.dot(w_ref[...], zp,                 # block-diag scaled conv
                              preferred_element_type=jnp.float32)
                      + b_ref[...])                           # folded BN bias
    else:
        x_ref, p_ref, o_ref = refs
        o_ref[...] = jnp.dot(x_ref[...], p_ref[...],
                             preferred_element_type=jnp.float32)


def _pooling_matrix(H, W, stride):
    """P[h*W+w, oh*Wo+ow] = 1/valid_count if (h,w) in the 3x3 window of (oh,ow).

    Encodes stride, zero padding and count_include_pad=False boundary counts.
    Every column sums to exactly 1 (so the BN bias commutes with the pool)."""
    Ho = (H + 2 - 3) // stride + 1
    Wo = (W + 2 - 3) // stride + 1
    P = np.zeros((H * W, Ho * Wo), np.float32)
    for oh in range(Ho):
        for ow in range(Wo):
            hs = [h for h in range(oh * stride - 1, oh * stride + 2) if 0 <= h < H]
            ws = [w for w in range(ow * stride - 1, ow * stride + 2) if 0 <= w < W]
            inv = 1.0 / (len(hs) * len(ws))          # count_include_pad=False
            for h in hs:
                for w in ws:
                    P[h * W + w, oh * Wo + ow] = inv
    return P, Ho, Wo


def _groups_per_step(G, C_in, C_out, max_rows=256):
    """Largest divisor gs of G with gs*max(C_in,C_out) <= max_rows rows per step."""
    if G * max(C_in, C_out) <= max_rows:
        return G
    for gs in range(G, 0, -1):
        if (G % gs == 0 and gs * max(C_in, C_out) <= max_rows
                and (gs * C_in) % 8 == 0 and (gs * C_out) % 8 == 0):
            return gs
    return G


def pooling_forward(x_nchw, params, C_in, C_out, stride):
    """NCHW in/out, like the PyTorch `Pooling` module (eval-mode BN)."""
    N, C, H, W = x_nchw.shape
    assert C == C_in
    x = x_nchw.astype(jnp.float32)
    P_np, Ho, Wo = _pooling_matrix(H, W, stride)
    HW, HWo = H * W, Ho * Wo
    has_pre = (C_in != C_out)

    # Lane packing: pair L batch elements along the lane axis so the pooled
    # output is >= 128 lanes wide (unmasked stores).  stride=1 -> L=1.
    L = 1
    if HWo < 128 and 128 % HWo == 0 and N % (128 // HWo) == 0:
        L = 128 // HWo
    G = N // L                                   # batch groups in the M (row) dim
    gs = _groups_per_step(G, C_in, C_out)        # groups per grid step
    S = G // gs                                  # grid steps (=1 at these shapes)

    # [N,C,H,W] -> [G,L,C,HW] -> [G,C,L,HW] -> [G*C, L*HW]   (tiny host reshape)
    x_pack = (x.reshape(G, L, C_in, HW)
               .transpose(0, 2, 1, 3)
               .reshape(G * C_in, L * HW))
    # Block-diagonal pooling matrix keeps the L lane-packed batch elems apart.
    P = jnp.asarray(np.kron(np.eye(L, dtype=np.float32), P_np))

    in_specs = [pl.BlockSpec((gs * C_in, L * HW), lambda s: (s, 0))]
    args = [x_pack]

    nnz = int(np.count_nonzero(P_np))
    flops = 2 * G * (C_in if has_pre else C_out) * L * nnz    # useful pool MACs
    if has_pre:
        scale, bias = params["scale"], params["bias"]          # [C_out, 1] each
        w_fused = scale * params["w"]                          # BN scale folded in
        w_bd = jnp.kron(jnp.eye(gs, dtype=jnp.float32), w_fused)  # [gs*C_out, gs*C_in]
        b_tile = jnp.tile(bias, (gs, 1))                       # [gs*C_out, 1]
        in_specs += [pl.BlockSpec((gs * C_out, gs * C_in), lambda s: (0, 0)),
                     pl.BlockSpec((gs * C_out, 1), lambda s: (0, 0))]
        args += [w_bd, b_tile]
        flops += 2 * G * C_out * C_in * L * HWo                # useful conv MACs
    in_specs.append(pl.BlockSpec((L * HW, L * HWo), lambda s: (0, 0)))
    args.append(P)

    bytes_accessed = (sum(int(np.prod(a.shape)) * 4 for a in args)
                      + G * C_out * L * HWo * 4)

    out = pl.pallas_call(
        functools.partial(_pooling_block_kernel, has_pre=has_pre),
        out_shape=jax.ShapeDtypeStruct((G * C_out, L * HWo), jnp.float32),
        grid=(S,),
        in_specs=in_specs,
        out_specs=pl.BlockSpec((gs * C_out, L * HWo), lambda s: (s, 0)),
        compiler_params=pltpu.CompilerParams(dimension_semantics=("parallel",)),
        cost_estimate=pl.CostEstimate(flops=flops, transcendentals=0,
                                      bytes_accessed=bytes_accessed),
    )(*args)

    # [G*C_out, L*HWo] -> [G, C_out, L, HWo] -> [G, L, C_out, HWo] -> NCHW out
    return (out.reshape(G, C_out, L, HWo)
               .transpose(0, 2, 1, 3)
               .reshape(N, C_out, Ho, Wo))


# ----------------------------------------------------------------------------
# Parameters (deterministic, synthetic; BN folded to scale/bias, eval mode)
# ----------------------------------------------------------------------------
def _bn_fold(key, c, eps=1e-5):
    k1, k2, k3, k4 = jax.random.split(key, 4)
    gamma = 1.0 + 0.1 * jax.random.normal(k1, (c,), jnp.float32)
    beta = 0.1 * jax.random.normal(k2, (c,), jnp.float32)
    mean = 0.1 * jax.random.normal(k3, (c,), jnp.float32)
    var = jax.random.uniform(k4, (c,), jnp.float32, 0.5, 1.5)
    scale = gamma / jnp.sqrt(var + eps)
    bias = beta - mean * scale
    return scale[:, None], bias[:, None]             # [C, 1] broadcasts over lanes


def init_params(key, C_in, C_out):
    if C_in == C_out:
        return {}                                    # preprocess = None
    kw, kb = jax.random.split(key)
    scale, bias = _bn_fold(kb, C_out)
    return {"w": 0.1 * jax.random.normal(kw, (C_out, C_in), jnp.float32),
            "scale": scale, "bias": bias}


# ----------------------------------------------------------------------------
# Pure-JAX reference (mirrors PyTorch: ReLU -> conv -> BN affine -> avg pool)
# ----------------------------------------------------------------------------
def ref_pooling(x_nchw, params, C_in, C_out, stride):
    hi = lax.Precision.HIGHEST
    x = x_nchw.astype(jnp.float32)
    if C_in != C_out:
        z = jnp.maximum(x, 0.0)
        z = jnp.einsum("nchw,oc->nohw", z, params["w"], precision=hi)
        x = (z * params["scale"][None, :, :, None]
             + params["bias"][None, :, :, None])
    pad = [(0, 0), (0, 0), (1, 1), (1, 1)]
    win, strides = (1, 1, 3, 3), (1, 1, stride, stride)
    s = lax.reduce_window(x, 0.0, lax.add, win, strides, pad)
    c = lax.reduce_window(jnp.ones_like(x), 0.0, lax.add, win, strides, pad)
    return s / c                                     # count_include_pad=False


if __name__ == "__main__":
    key = jax.random.PRNGKey(0)
    N, H, W = 2, 16, 16
    cases = [
        dict(C_in=4, C_out=8, stride=2),   # ReLUConvBN preprocess + stride-2 pool
        dict(C_in=4, C_out=8, stride=1),   # ReLUConvBN preprocess + stride-1 pool
        dict(C_in=4, C_out=4, stride=2),   # identity preprocess + stride-2 pool
        dict(C_in=4, C_out=4, stride=1),   # identity preprocess + stride-1 pool
    ]
    for i, cfg in enumerate(cases):
        kx, kp = jax.random.split(jax.random.fold_in(key, i))
        x = jax.random.normal(kx, (N, cfg["C_in"], H, W), jnp.float32)   # NCHW
        params = init_params(kp, cfg["C_in"], cfg["C_out"])
        out = jax.block_until_ready(pooling_forward(x, params, **cfg))
        ref = ref_pooling(x, params, **cfg)
        assert out.shape == ref.shape, (out.shape, ref.shape)
        np.testing.assert_allclose(np.asarray(out), np.asarray(ref),
                                   rtol=5e-3, atol=5e-3)
    print("KERNEL_OK")
</pallas_src>

<mosaic_0001>
module attributes {stable_mosaic.version = 11 : i64} {
  func.func @_pooling_block_kernel(%arg0: i32, %arg1: memref<4x512xf32, #tpu.memory_space<vmem>>, %arg2: memref<8x4xf32, #tpu.memory_space<vmem>>, %arg3: memref<8x1xf32, #tpu.memory_space<vmem>>, %arg4: memref<512x128xf32, #tpu.memory_space<vmem>>, %arg5: memref<8x128xf32, #tpu.memory_space<vmem>>) attributes {dimension_semantics = [#tpu.dimension_semantics<parallel>], iteration_bounds = array<i64: 1>, scalar_prefetch = 0 : i64, scratch_operands = 0 : i64, tpu.core_type = #tpu.core_type<tc>, window_params = [{transform_indices = @transform_0, window_bounds = array<i64: 4, 512>}, {pipeline_mode = #tpu.pipeline_mode<synchronous>, transform_indices = @transform_1, window_bounds = array<i64: 8, 4>}, {pipeline_mode = #tpu.pipeline_mode<synchronous>, transform_indices = @transform_2, window_bounds = array<i64: 8, 1>}, {pipeline_mode = #tpu.pipeline_mode<synchronous>, transform_indices = @transform_3, window_bounds = array<i64: 512, 128>}, {transform_indices = @transform_4, window_bounds = array<i64: 8, 128>}]} {
    %c0 = arith.constant 0 : index
    %c0_0 = arith.constant 0 : index
    %0 = vector.load %arg1[%c0, %c0_0] : memref<4x512xf32, #tpu.memory_space<vmem>>, vector<4x512xf32>
    %cst = arith.constant 0.000000e+00 : f32
    %1 = vector.broadcast %cst : f32 to vector<4x512xf32>
    %2 = arith.maximumf %0, %1 : vector<4x512xf32>
    %c0_1 = arith.constant 0 : index
    %c0_2 = arith.constant 0 : index
    %3 = vector.load %arg4[%c0_1, %c0_2] : memref<512x128xf32, #tpu.memory_space<vmem>>, vector<512x128xf32>
    %cst_3 = arith.constant dense<0.000000e+00> : vector<4x128xf32>
    %4 = tpu.matmul %2, %3, %cst_3 {dimension_numbers = #tpu.dot_dimension_numbers<[1], [0], [0], [1], [0, 0, 1, 1], [], []>} : vector<4x512xf32>, vector<512x128xf32>, vector<4x128xf32> -> vector<4x128xf32>
    %c0_4 = arith.constant 0 : index
    %c0_5 = arith.constant 0 : index
    %5 = vector.load %arg2[%c0_4, %c0_5] : memref<8x4xf32, #tpu.memory_space<vmem>>, vector<8x4xf32>
    %cst_6 = arith.constant dense<0.000000e+00> : vector<8x128xf32>
    %6 = tpu.matmul %5, %4, %cst_6 {dimension_numbers = #tpu.dot_dimension_numbers<[1], [0], [0], [1], [0, 0, 1, 1], [], []>} : vector<8x4xf32>, vector<4x128xf32>, vector<8x128xf32> -> vector<8x128xf32>
    %c0_7 = arith.constant 0 : index
    %c0_8 = arith.constant 0 : index
    %7 = vector.load %arg3[%c0_7, %c0_8] : memref<8x1xf32, #tpu.memory_space<vmem>>, vector<8x1xf32>
    %8 = vector.broadcast %7 : vector<8x1xf32> to vector<8x128xf32>
    %9 = arith.addf %6, %8 : vector<8x128xf32>
    %c0_9 = arith.constant 0 : index
    %c0_10 = arith.constant 0 : index
    %10 = vector.load %arg5[%c0_9, %c0_10] : memref<8x128xf32, #tpu.memory_space<vmem>>, vector<8x128xf32>
    tpu.vector_store %arg5[%c0_9, %c0_10], %9 {strides = array<i32>} : memref<8x128xf32, #tpu.memory_space<vmem>>, vector<8x128xf32>,
    return
  }
  func.func @transform_0(%arg0: i32) -> (i32, i32) {
    %c0_i32 = arith.constant 0 : i32
    %c0_i32_0 = arith.constant 0 : i32
    return %arg0, %c0_i32 : i32, i32
  }
  func.func @transform_1(%arg0: i32) -> (i32, i32) {
    %c0_i32 = arith.constant 0 : i32
    %c0_i32_0 = arith.constant 0 : i32
    %c0_i32_1 = arith.constant 0 : i32
    return %c0_i32, %c0_i32_0 : i32, i32
  }
  func.func @transform_2(%arg0: i32) -> (i32, i32) {
    %c0_i32 = arith.constant 0 : i32
    %c0_i32_0 = arith.constant 0 : i32
    %c0_i32_1 = arith.constant 0 : i32
    return %c0_i32, %c0_i32_0 : i32, i32
  }
  func.func @transform_3(%arg0: i32) -> (i32, i32) {
    %c0_i32 = arith.constant 0 : i32
    %c0_i32_0 = arith.constant 0 : i32
    %c0_i32_1 = arith.constant 0 : i32
    return %c0_i32, %c0_i32_0 : i32, i32
  }
  func.func @transform_4(%arg0: i32) -> (i32, i32) {
    %c0_i32 = arith.constant 0 : i32
    %c0_i32_0 = arith.constant 0 : i32
    return %arg0, %c0_i32 : i32, i32
  }
}

</mosaic_0001>

<bundles_post_ra>
// kernel: tpu_custom_call.1
= control target key start
LH: loop header
LB: loop body
LE: loop exit
PB: predicated region body
PF: predicated region fallthrough
CT: control target
= control target key end

     0   :  { %9 = vsyncpa [#allocation3], 0  ;;  %s614_s0 = inlined_call_operand.vmem [shape: f32[4,512], index: 0, kind: input, shape index: {}]   ;;  %s615_s1 = inlined_call_operand.vmem [shape: f32[8,4], index: 1, kind: input, shape index: {}]   ;;  %s616_s2 = inlined_call_operand.vmem [shape: f32[8,1], index: 2, kind: input, shape index: {}]   ;;  %s617_s3 = inlined_call_operand.hbm [shape: f32[512,128], index: 3, kind: input, shape index: {}]   ;;  %s618_s4 = inlined_call_operand.hbm [shape: f32[8,128], index: 4, kind: output, shape index: {}]  }
   0x1   :  { %10 = vsyncpa [#allocation4], 0  ;;  %s546_s15 = smov [#allocation2]   ;;  %s498_s19 = scalar_lea.hbm %s617_s3, 8192 }
   0x2   :  { %s22_s16 = sshll.u32 %s546_s15, 4  ;;  %p499_p0 = scmp.ne.s32.totalorder %s617_s3, %s498_s19  ;;  %s23_s16 = int_to_ptr.vmem [resolvable:$true] %s22_s16 }
   0x3   :  { %p502_p1 = scmp.lt.u32.totalorder %s498_s19, %s617_s3 }
   0x5   :  { %p504_p2 = pnand %p502_p1, %p499_p0 }
   0x7   :  { %507 = shalt.err (!%p504_p2)
}
   0x8   :  { %s508_s24 = scalar_lea.vmem %s23_s16, 8192  ;;  %p513_p4 = scmp.lt.s32.totalorder %s23_s16, %s23_s16 }
   0x9   :  { %p509_p3 = scmp.ne.s32.totalorder %s23_s16, %s508_s24  ;;  %p514_p5 = scmp.lt.s32.totalorder %s508_s24, %s508_s24 }
   0xb   :  { %p515_p6 = por %p514_p5, %p513_p4 }
   0xd   :  { %p516_p7 = pnand %p515_p6, %p509_p3 }
   0xf   :  { %519 = shalt.err (!%p516_p7)
}
  0x10   :  { %s547_s25 = smov 128   ;;  %s548_s26 = smov 8  }
  0x11   :  { %28 = dma.hbm_to_vmem [thread:$0]  %s617_s3, 8192, %s23_s16, [#allocation3], %s547_s25, %s547_s25, %s548_s26  }
  0x12   :  { %542 = dma.done.wait [#allocation3], 8192  }
  0x13   :  { %543 = vsyncadd [#allocation3], 4294959104  ;;  %v52_v0 = vld [vmem:[#allocation2 + $0x80] sm:$0xff]  ;;  %v53_v1 = vld [vmem:[#allocation2 + $0x88] sm:$0xff]  ;;  %vm550_vm0 = vmmov 0   ;;  %vm257_vm1 = vcmask 1043456  }
  0x14   :  { %v84_v2 = vld [vmem:[#allocation2 + $0x180] sm:$0xff]  ;;  %v426_v3 = vpack.c.bf16 %v53_v1, %v52_v0  ;;  %v85_v4 = vld [vmem:[#allocation2 + $0x188] sm:$0xff]  ;;  %v54_v11 = vld [vmem:[#allocation2 + $0x90] sm:$0xff]  ;;  %vm253_vm2 = vcmask 31744  }
  0x15   :  { %v36_v5 = vld [vmem:[#allocation2] sm:$0xff]  ;;  %v37_v6 = vld [vmem:[#allocation2 + $0x8] sm:$0xff]  ;;  %v458_v7 = vpack.c.bf16 %v85_v4, %v84_v2  ;;  %v55_v13 = vld [vmem:[#allocation2 + $0x98] sm:$0xff] }
  0x16   :  { %v428_v8 = vpack.c.bf16 %v37_v6, %v36_v5  ;;  %v68_v9 = vld [vmem:[#allocation2 + $0x100] sm:$0xff]  ;;  %v69_v10 = vld [vmem:[#allocation2 + $0x108] sm:$0xff]  ;;  %427 = vmatprep.subr.bf16.mxu0 %v426_v3  ;;  %v86_v14 = vld [vmem:[#allocation2 + $0x190] sm:$0xff]  ;;  %v430_v16 = vpack.c.bf16 %v55_v13, %v54_v11 }
  0x17   :  { %v460_v12 = vpack.c.bf16 %v69_v10, %v68_v9  ;;  %v87_v15 = vld [vmem:[#allocation2 + $0x198] sm:$0xff]  ;;  %459 = vmatprep.subr.bf16.mxu1 %v458_v7  ;;  %v38_v18 = vld [vmem:[#allocation2 + $0x10] sm:$0xff]  ;;  %v56_v23 = vld [vmem:[#allocation2 + $0xa0] sm:$0xff] }
  0x18   :  { %429 = vmatpush3.bf16.msra.mxu0 %v428_v8  ;;  %v462_v17 = vpack.c.bf16 %v87_v15, %v86_v14  ;;  %v39_v19 = vld [vmem:[#allocation2 + $0x18] sm:$0xff]  ;;  %v70_v20 = vld [vmem:[#allocation2 + $0x110] sm:$0xff]  ;;  %v57_v24 = vld [vmem:[#allocation2 + $0xa8] sm:$0xff] }
  0x19   :  { %461 = vmatpush3.bf16.msra.mxu1 %v460_v12  ;;  %v432_v21 = vpack.c.bf16 %v39_v19, %v38_v18  ;;  %v71_v22 = vld [vmem:[#allocation2 + $0x118] sm:$0xff]  ;;  %431 = vmatprep.subr.bf16.mxu0 %v430_v16  ;;  %v434_v26 = vpack.c.bf16 %v57_v24, %v56_v23  ;;  %v88_v27 = vld [vmem:[#allocation2 + $0x1a0] sm:$0xff]  ;;  %v89_v28 = vld [vmem:[#allocation2 + $0x1a8] sm:$0xff] }
  0x1a   :  { %463 = vmatprep.subr.bf16.mxu1 %v462_v17  ;;  %v464_v25 = vpack.c.bf16 %v71_v22, %v70_v20  ;;  %v40_v29 = vld [vmem:[#allocation2 + $0x20] sm:$0xff]  ;;  %v466_v30 = vpack.c.bf16 %v89_v28, %v88_v27  ;;  %v41_v31 = vld [vmem:[#allocation2 + $0x28] sm:$0xff]  ;;  %v58_v35 = vld [vmem:[#allocation2 + $0xb0] sm:$0xff] }
  0x1b   :  { %v72_v32 = vld [vmem:[#allocation2 + $0x120] sm:$0xff]  ;;  %v73_v33 = vld [vmem:[#allocation2 + $0x128] sm:$0xff]  ;;  %v436_v34 = vpack.c.bf16 %v41_v31, %v40_v29  ;;  %v59_v36 = vld [vmem:[#allocation2 + $0xb8] sm:$0xff] }
  0x1c   :  { %433 = vmatpush3.bf16.msra.mxu0 %v432_v21  ;;  %v90_v37 = vld [vmem:[#allocation2 + $0x1b0] sm:$0xff]  ;;  %v468_v38 = vpack.c.bf16 %v73_v33, %v72_v32  ;;  %v438_v39 = vpack.c.bf16 %v59_v36, %v58_v35  ;;  %v91_v40 = vld [vmem:[#allocation2 + $0x1b8] sm:$0xff]  ;;  %v60_v46 = vld [vmem:[#allocation2 + $0xc0] sm:$0xff] }
  0x1d   :  { %465 = vmatpush3.bf16.msra.mxu1 %v464_v25  ;;  %435 = vmatprep.subr.bf16.mxu0 %v434_v26  ;;  %v42_v41 = vld [vmem:[#allocation2 + $0x30] sm:$0xff]  ;;  %v43_v42 = vld [vmem:[#allocation2 + $0x38] sm:$0xff]  ;;  %v470_v43 = vpack.c.bf16 %v91_v40, %v90_v37  ;;  %v61_v47 = vld [vmem:[#allocation2 + $0xc8] sm:$0xff]  ;;  %v551_v40 = vmov 0  }
  0x1e   :  { %467 = vmatprep.subr.bf16.mxu1 %v466_v30  ;;  %v74_v44 = vld [vmem:[#allocation2 + $0x130] sm:$0xff]  ;;  %v75_v45 = vld [vmem:[#allocation2 + $0x138] sm:$0xff]  ;;  %v92_v48 = vld [vmem:[#allocation2 + $0x1c0] sm:$0xff]  ;;  %v440_v50 = vpack.c.bf16 %v43_v42, %v42_v41  ;;  %v442_v52 = vpack.c.bf16 %v61_v47, %v60_v46  ;;  %497 = vset.pattern.permute.xlu0 %v551_v40 }
  0x1f   :  { %v93_v49 = vld [vmem:[#allocation2 + $0x1c8] sm:$0xff]  ;;  %v472_v51 = vpack.c.bf16 %v75_v45, %v74_v44  ;;  %v44_v53 = vld [vmem:[#allocation2 + $0x40] sm:$0xff]  ;;  %v62_v58 = vld [vmem:[#allocation2 + $0xd0] sm:$0xff] }
  0x20   :  { %437 = vmatpush3.bf16.msra.mxu0 %v436_v34  ;;  %v45_v54 = vld [vmem:[#allocation2 + $0x48] sm:$0xff]  ;;  %v76_v55 = vld [vmem:[#allocation2 + $0x140] sm:$0xff]  ;;  %v474_v56 = vpack.c.bf16 %v93_v49, %v92_v48  ;;  %v63_v59 = vld [vmem:[#allocation2 + $0xd8] sm:$0xff] }
  0x21   :  { %469 = vmatpush3.bf16.msra.mxu1 %v468_v38  ;;  %439 = vmatprep.subr.bf16.mxu0 %v438_v39  ;;  %v77_v57 = vld [vmem:[#allocation2 + $0x148] sm:$0xff]  ;;  %v94_v60 = vld [vmem:[#allocation2 + $0x1d0] sm:$0xff]  ;;  %v95_v61 = vld [vmem:[#allocation2 + $0x1d8] sm:$0xff]  ;;  %v444_v62 = vpack.c.bf16 %v45_v54, %v44_v53  ;;  %v446_v0 = vpack.c.bf16 %v63_v59, %v62_v58  ;;  %v549_v38 = vmov 0.0  }
  0x22   :  { %471 = vmatprep.subr.bf16.mxu1 %v470_v43  ;;  %v476_v63 = vpack.c.bf16 %v77_v57, %v76_v55  ;;  %v46_v1 = vld [vmem:[#allocation2 + $0x50] sm:$0xff]  ;;  %v47_v2 = vld [vmem:[#allocation2 + $0x58] sm:$0xff]  ;;  %v478_v4 = vpack.c.bf16 %v95_v61, %v94_v60  ;;  %v64_v6 = vld [vmem:[#allocation2 + $0xe0] sm:$0xff] }
  0x23   :  { %v78_v3 = vld [vmem:[#allocation2 + $0x150] sm:$0xff]  ;;  %v79_v5 = vld [vmem:[#allocation2 + $0x158] sm:$0xff]  ;;  %v65_v7 = vld [vmem:[#allocation2 + $0xe8] sm:$0xff]  ;;  %v448_v10 = vpack.c.bf16 %v47_v2, %v46_v1 }
  0x24   :  { %441 = vmatpush3.bf16.msra.mxu0 %v440_v50  ;;  %v96_v8 = vld [vmem:[#allocation2 + $0x1e0] sm:$0xff]  ;;  %v97_v9 = vld [vmem:[#allocation2 + $0x1e8] sm:$0xff]  ;;  %v480_v13 = vpack.c.bf16 %v79_v5, %v78_v3  ;;  %v450_v14 = vpack.c.bf16 %v65_v7, %v64_v6  ;;  %v66_v20 = vld [vmem:[#allocation2 + $0xf0] sm:$0xff] }
  0x25   :  { %473 = vmatpush3.bf16.msra.mxu1 %v472_v51  ;;  %443 = vmatprep.subr.bf16.mxu0 %v442_v52  ;;  %v48_v11 = vld [vmem:[#allocation2 + $0x60] sm:$0xff]  ;;  %v49_v12 = vld [vmem:[#allocation2 + $0x68] sm:$0xff]  ;;  %v482_v18 = vpack.c.bf16 %v97_v9, %v96_v8  ;;  %v67_v21 = vld [vmem:[#allocation2 + $0xf8] sm:$0xff] }
  0x26   :  { %475 = vmatprep.subr.bf16.mxu1 %v474_v56  ;;  %v80_v15 = vld [vmem:[#allocation2 + $0x160] sm:$0xff]  ;;  %v33_v17 = vld [vmem:[%s614_s0 + $0x8] sm:$0xff]  ;;  %v98_v24 = vld [vmem:[#allocation2 + $0x1f0] sm:$0xff]  ;;  %v452_v26 = vpack.c.bf16 %v49_v12, %v48_v11  ;;  %v454_v30 = vpack.c.bf16 %v67_v21, %v66_v20 }
  0x27   :  { %v32_v16 = vld [vmem:[%s614_s0] sm:$0xff]  ;;  %v81_v19 = vld [vmem:[#allocation2 + $0x168] sm:$0xff]  ;;  %v35_v23 = vmax.f32 %v33_v17, 0.0  ;;  %v99_v25 = vld [vmem:[#allocation2 + $0x1f8] sm:$0xff] }
  0x28   :  { %445 = vmatpush3.bf16.msra.mxu0 %v444_v62  ;;  %v34_v22 = vmax.f32 %v32_v16, 0.0  ;;  %v484_v29 = vpack.c.bf16 %v81_v19, %v80_v15  ;;  %v50_v31 = vld [vmem:[#allocation2 + $0x70] sm:$0xff]  ;;  %v51_v32 = vld [vmem:[#allocation2 + $0x78] sm:$0xff]  ;;  %v486_v33 = vpack.c.bf16 %v99_v25, %v98_v24  ;;  %v247_v39 = vld [vmem:[%s616_s2] sm:$0xff]  ;;  %s552_s2 = smov [#allocation5]  }
  0x29   :  { %477 = vmatpush3.bf16.msra.mxu1 %v476_v63  ;;  %447 = vmatprep.subr.bf16.mxu0 %v446_v0  ;;  %v103_v28 = vcombine.high %v35_v23, %v35_v23  ;;  %v82_v34 = vld [vmem:[#allocation2 + $0x170] sm:$0xff]  ;;  %v83_v35 = vld [vmem:[#allocation2 + $0x178] sm:$0xff]  ;;  %v456_v36 = vpack.c.bf16 %v51_v32, %v50_v31  ;;  %v246_v48 = vld [vmem:[%s615_s1] sm:$0xff]  ;;  %s338_s9 = sshll.u32 %s552_s2, 4  ;;  %s339_s9 = int_to_ptr.vmem [resolvable:$true] %s338_s9 }
  0x2a   :  { %479 = vmatprep.subr.bf16.mxu1 %v478_v4  ;;  %v102_v27 = vcombine.high %v34_v22, %v34_v22  ;;  %v488_v37 = vpack.c.bf16 %v83_v35, %v82_v34  ;;  %250 = vperm.xlu0 %497, %v247_v39   ;;  %s520_s10 = scalar_lea.vmem %s339_s9, 128  ;;  %p525_p9 = scmp.lt.s32.totalorder %s339_s9, %s339_s9 }
  0x2b   :  { %240 = vmatprep.mubr.f32.mxu1 %v103_v28  ;;  %p521_p8 = scmp.ne.s32.totalorder %s339_s9, %s520_s10  ;;  %p526_p10 = scmp.lt.s32.totalorder %s520_s10, %s520_s10 }
  0x2c   :  { %449 = vmatpush3.bf16.msra.mxu0 %v448_v10  ;;  %170 = vmatprep.mubr.f32.mxu0 %v102_v27 }
  0x2d   :  { %481 = vmatpush3.bf16.msra.mxu1 %v480_v13  ;;  %451 = vmatprep.subr.bf16.mxu0 %v450_v14  ;;  %p527_p11 = por %p526_p10, %p525_p9 }
  0x2e   :  { %483 = vmatprep.subr.bf16.mxu1 %v482_v18 }
  0x2f   :  { %p528_p12 = pnand %p527_p11, %p521_p8 }
  0x30   :  { %453 = vmatpush3.bf16.msra.mxu0 %v452_v26 }
  0x31   :  { %485 = vmatpush3.bf16.msra.mxu1 %v484_v29  ;;  %455 = vmatprep.subr.bf16.mxu0 %v454_v30 }
  0x32   :  { %487 = vmatprep.subr.bf16.mxu1 %v486_v33 }
  0x34   :  { %457 = vmatpush3.bf16.msra.mxu0 %v456_v36 }
  0x35   :  { %489 = vmatpush3.bf16.msra.mxu1 %v488_v37  ;;  %421 = vmatprep.subr.mxu0 %v549_v38 }
  0x37   :  { %171 = vmatmul.mubr.f32.vlgmr.msra.gmra.mrb[0].mxu0 %v34_v22 }
  0x38   :  { %241 = vmatmul.mubr.f32.vlgmr.msra.gmra.mrb[0].mxu1 %v35_v23  ;;  %423 = vmatprep.mubr.msk.f32.mxu0 %vm550_vm0, %v549_v38 }
  0xa9   :  { %v251_v49 = vpop.permute.xlu0 %250 }
 0x10a   :  { %v381_v41 = vpop.f32.mrb[0].mxu0 }
 0x10b   :  { %v416_v42 = vpop.f32.mrb[0].mxu1  ;;  %v382_v43 = vpop.f32.mrb[1].mxu0 }
 0x10c   :  { %v383_v44 = vadd.f32 %v382_v43, %v381_v41  ;;  %v417_v45 = vpop.f32.mrb[1].mxu1 }
 0x10d   :  { %v418_v46 = vadd.f32 %v417_v45, %v416_v42 }
 0x10f   :  { %v243_v47 = vadd.f32 %v418_v46, %v383_v44 }
 0x111   :  { %422 = vmatpush3.msk.msra.mxu0 %vm257_vm1, %v243_v47 }
 0x112   :  { %424 = vmatmul.mubr.msk.f32.vlgmr.msra.gmra.mrb[2].mxu0 %vm253_vm2, %v246_v48 }
 0x1e5   :  { %v327_v50 = vpop.f32.mrb[2].mxu0 }
 0x1e6   :  { %v328_v51 = vadd.f32 %v327_v50, %v251_v49  ;;  %v425_v52 = vpop.f32.mrb[3].mxu0 }
 0x1e8   :  { %331 = vst [vmem:[#allocation5] sm:$0xff] %v328_v51 }
 0x1e9   :  { %531 = shalt.err (!%p528_p12)
}
 0x1ea   :  { %s532_s12 = scalar_lea.hbm %s618_s4, 128 }
 0x1eb   :  { %p533_p13 = scmp.ne.s32.totalorder %s618_s4, %s532_s12  ;;  %p536_p0 = scmp.lt.u32.totalorder %s532_s12, %s618_s4 }
 0x1ed   :  { %p538_p1 = pnand %p536_p0, %p533_p13 }
 0x1ef   :  { %541 = shalt.err (!%p538_p1)
}
 0x1f0   :  { %341 = dma.vmem_to_hbm [thread:$0]  %s339_s9, 128, %s618_s4, [#allocation4]  }
 0x1f1   :  { %544 = dma.done.wait [#allocation4], 128  }
 0x1f2   :  { %545 = vsyncadd [#allocation4], 4294967168 }
 0x1f3   :  { %345 = vsyncpa [#allocation3], 1 }
 0x1f4   :  { %346 = vsyncpa [#allocation4], 1 }

</bundles_post_ra>
